<compile_context>
chip_gen: v7x
topology: tpu7x:2x2x1
jax: 0.10.0
libtpu: 0.0.40
codegen_flags: <defaults>
</compile_context>

<pallas_src>
import jax
import jax.numpy as jnp
from jax import lax
from jax.experimental import pallas as pl
from jax.experimental.pallas import tpu as pltpu


# ----------------------------------------------------------------------------
# Kernel
# ----------------------------------------------------------------------------
def _scores_kernel(h_idx_ref,    # (L*B,) int32 in SMEM (scalar prefetch)
                   lhs_ref,      # ((L+1)*B, E) bf16, resident
                   npd_ref,      # (L*B, 1) f32, resident (-pos_decay[s] per row)
                   dist_hbm,     # (item_count, I_pad) f32, HBM (pl.ANY)
                   all_emb_ref,  # (tile_i, E) bf16 tile
                   out_ref,      # (B, tile_i) f32 tile
                   d_buf,        # VMEM (L*B, tile_i) f32 scratch
                   sem):         # DMA semaphore
    B = out_ref.shape[0]
    LB, tile_i = d_buf.shape
    L = LB // B
    col = pl.multiple_of(pl.program_id(0) * tile_i, tile_i)

    # ---- start the L*B distance-row gather DMAs for this tile (HBM -> VMEM)
    def _start(r, carry):
        idx = h_idx_ref[r]
        pltpu.make_async_copy(
            dist_hbm.at[pl.ds(idx, 1), pl.ds(col, tile_i)],
            d_buf.at[pl.ds(r, 1), :],
            sem).start()
        return carry
    lax.fori_loop(0, LB, _start, 0)

    # ---- single fused MXU matmul: ((L+1)*B, E) x (tile_i, E)^T, f32 accum.
    # No data dependence on d_buf, so it overlaps the gather DMAs above.
    r = lax.dot_general(lhs_ref[...], all_emb_ref[...],
                        (((1,), (1,)), ((), ())),
                        preferred_element_type=jnp.float32)

    # ---- wait for all gathered distance rows
    def _wait(rr, carry):
        idx = h_idx_ref[rr]
        pltpu.make_async_copy(
            dist_hbm.at[pl.ds(idx, 1), pl.ds(col, tile_i)],
            d_buf.at[pl.ds(rr, 1), :],
            sem).wait()
        return carry
    lax.fori_loop(0, LB, _wait, 0)

    # position influence: exp(-(d * pos_decay)) with -pos_decay prefolded.
    pos_inf = jnp.exp(d_buf[...] * npd_ref[...])          # (L*B, tile_i) f32

    weighted = r[B:, :] * pos_inf                          # (L*B, tile_i)
    acc = r[:B, :]                                         # long-term + time terms
    for l in range(L):                                     # static row-block adds
        acc = acc + weighted[l * B:(l + 1) * B, :]
    out_ref[...] = acc


# ----------------------------------------------------------------------------
# One-time (model-load) preparation: bf16 item table, padded distance columns,
# item-tile size and VMEM budget.  Keeps all of this OFF the per-call path.
# ----------------------------------------------------------------------------
def _pick_tile(item_count, emb_size, batch_size, hist_len, tile_req):
    tile = min(tile_req, pl.cdiv(item_count, 256) * 256)
    # v7x: keep >= 2 tiles so the single "parallel" axis can split across 2 TCs.
    if item_count > 512 and pl.cdiv(item_count, tile) < 2:
        tile = pl.cdiv(pl.cdiv(item_count, 2), 256) * 256

    def vmem_need(t):
        return (2 * t * emb_size * 2                         # all_emb tile (bf16, 2 bufs)
                + 2 * batch_size * t * 4                     # output tile (f32, 2 bufs)
                + hist_len * batch_size * t * 4              # distance scratch (f32)
                + 2 * ((hist_len + 1) * batch_size * emb_size * 2
                       + hist_len * batch_size * 4)          # resident lhs + npd
                + (2 << 20))                                  # headroom

    while tile > 256 and vmem_need(tile) > (40 << 20):
        tile = max(256, (tile // 2 // 256) * 256)
    return tile, vmem_need(tile)


def prepare_params(params, *, batch_size, hist_len, tile_i=2048):
    item_count = int(params["item_count"])
    emb = params["emb"]
    E = emb.shape[1]
    tile, need = _pick_tile(item_count, E, batch_size, hist_len, tile_i)
    i_pad = pl.cdiv(item_count, tile) * tile

    p = dict(params)
    emb_items = emb[:item_count].astype(jnp.bfloat16)
    p["emb_items_bf16"] = jnp.pad(emb_items, ((0, i_pad - item_count), (0, 0)))
    p["all_dist_pad"] = jnp.pad(params["all_dist"].astype(jnp.float32),
                                ((0, 0), (0, i_pad - item_count)))
    p["tile_i"] = tile
    p["i_pad"] = i_pad
    p["vmem_limit"] = int(min(48 << 20, max(32 << 20, need)))
    return p


# ----------------------------------------------------------------------------
# Forward (matches Model.forward semantics)
# ----------------------------------------------------------------------------
def forward(params, s_nodes, h_nodes, h_times, h_masks, t_time):
    emb = params["emb"]
    item_count = int(params["item_count"])
    w_item, b_item = params["w_item"], params["b_item"]
    w_user, b_user = params["w_user"], params["b_user"]

    B, L = h_nodes.shape
    E = emb.shape[1]

    if "emb_items_bf16" not in params:     # ideally done once at model-load time
        params = prepare_params(params, batch_size=B, hist_len=L)
    all_emb = params["emb_items_bf16"]     # (i_pad, E) bf16, precomputed
    all_dist = params["all_dist_pad"]      # (item_count, i_pad) f32, precomputed
    tile_i = int(params["tile_i"])
    i_pad = int(params["i_pad"])
    n_tiles = i_pad // tile_i

    # ---------------- tile-invariant precompute (O(B*E), O(B*L)) -------------
    s_emb = emb[s_nodes]                                                # (B, E)
    h_emb = emb[h_nodes]                                                # (B, L, E)
    time_decay_s = jnp.maximum(params["time_decay"][s_nodes], 1e-6)    # clamp_(min=1e-6)
    pos_decay_s = jnp.maximum(params["pos_decay"][s_nodes], 1e-6)

    short_raw = jax.nn.relu(jnp.mean(h_emb, axis=1) @ w_item.T + b_item[0])
    long_raw = jax.nn.relu(s_emb @ w_user.T + b_user[0])
    aw = jax.nn.softmax(jnp.concatenate([short_raw, long_raw], axis=1), axis=1)
    short_w, long_w = aw[:, 0:1], aw[:, 1:2]                            # (B, 1)

    d_time = jnp.log1p(jnp.abs(h_times - t_time[:, None]))              # (B, L)
    time_inf = jnp.exp(-(d_time * time_decay_s[:, None]))               # (B, L)

    coef = (short_w / L) * h_masks                                      # (B, L)
    base = long_w * s_emb + jnp.einsum("bl,ble->be", coef * time_inf, h_emb)
    h_rows = jnp.transpose(coef[:, :, None] * h_emb, (1, 0, 2)).reshape(L * B, E)
    lhs = jnp.concatenate([base, h_rows], axis=0).astype(jnp.bfloat16)  # ((L+1)*B, E)

    npd = jnp.tile(-pos_decay_s[:, None], (L, 1)).astype(jnp.float32)   # (L*B, 1)
    h_idx = jnp.transpose(h_nodes).reshape(-1).astype(jnp.int32)        # (L*B,), row l*B+b

    grid_spec = pltpu.PrefetchScalarGridSpec(
        num_scalar_prefetch=1,
        grid=(n_tiles,),
        in_specs=[
            pl.BlockSpec(((L + 1) * B, E), lambda i, hidx: (0, 0)),   # fused LHS (resident)
            pl.BlockSpec((L * B, 1), lambda i, hidx: (0, 0)),         # -pos_decay per row
            pl.BlockSpec(memory_space=pl.ANY),                        # all_dist stays in HBM
            pl.BlockSpec((tile_i, E), lambda i, hidx: (i, 0)),        # item-embedding tile
        ],
        out_specs=pl.BlockSpec((B, tile_i), lambda i, hidx: (0, i)),
        scratch_shapes=[
            pltpu.VMEM((L * B, tile_i), jnp.float32),                 # gathered distance rows
            pltpu.SemaphoreType.DMA(()),
        ],
    )

    out = pl.pallas_call(
        _scores_kernel,
        out_shape=jax.ShapeDtypeStruct((B, i_pad), jnp.float32),
        grid_spec=grid_spec,
        compiler_params=pltpu.CompilerParams(
            dimension_semantics=("parallel",),
            vmem_limit_bytes=int(params["vmem_limit"])),
    )(h_idx, lhs, npd, all_dist, all_emb)
    return out[:, :item_count]


# ----------------------------------------------------------------------------
# Pure-JAX (f32) mirror of Model.forward for verification
# ----------------------------------------------------------------------------
def reference(params, s_nodes, h_nodes, h_times, h_masks, t_time):
    emb = params["emb"]
    time_decay = jnp.maximum(params["time_decay"], 1e-6)
    pos_decay = jnp.maximum(params["pos_decay"], 1e-6)
    all_dist = params["all_dist"]
    I = params["item_count"]
    w_item, b_item = params["w_item"], params["b_item"]
    w_user, b_user = params["w_user"], params["b_user"]

    s_emb = emb[s_nodes]
    h_emb = emb[h_nodes]
    short_raw = jax.nn.relu(jnp.mean(h_emb, axis=1) @ w_item.T + b_item[0])
    long_raw = jax.nn.relu(s_emb @ w_user.T + b_user[0])
    aw = jax.nn.softmax(jnp.concatenate([short_raw, long_raw], axis=1), axis=1)
    sw, lw = aw[:, 0:1], aw[:, 1:2]
    d_time = jnp.log1p(jnp.abs(h_times - t_time[:, None]))
    ti = jnp.exp(-(d_time * time_decay[s_nodes][:, None]))
    d_pos = all_dist[h_nodes, :]
    pi = jnp.exp(-(d_pos * pos_decay[s_nodes][:, None, None]))
    all_emb = emb[:I]
    alpha = jnp.einsum("ble,ie->bli", h_emb, all_emb)
    short_pref = jnp.mean(alpha * (pi + ti[:, :, None]) * h_masks[:, :, None], axis=1)
    long_pref = s_emb @ all_emb.T
    return lw * long_pref + sw * short_pref


if __name__ == "__main__":
    key = jax.random.PRNGKey(0)
    B, E, L = 8, 128, 2
    user_count, item_count = 64, 256
    node_count = user_count + item_count

    ks = jax.random.split(key, 12)
    params = {
        "emb": 0.1 * jax.random.normal(ks[0], (node_count, E), jnp.float32),
        "time_decay": jax.nn.sigmoid(jax.random.normal(ks[1], (node_count,), jnp.float32)),
        "pos_decay": jax.nn.sigmoid(jax.random.normal(ks[2], (node_count,), jnp.float32)),
        "w_item": 0.05 * jax.random.normal(ks[3], (1, E), jnp.float32),
        "b_item": jnp.full((1, 1), 0.01, jnp.float32),
        "w_user": 0.05 * jax.random.normal(ks[4], (1, E), jnp.float32),
        "b_user": jnp.full((1, 1), -0.02, jnp.float32),
        # TODO(synk): real model loads all_dist from poi_position_path; use synthetic distances
        "all_dist": jnp.abs(jax.random.normal(ks[5], (item_count, item_count), jnp.float32)),
        "item_count": item_count,
    }

    s_nodes = jax.random.randint(ks[6], (B,), item_count, node_count)       # "user" nodes
    h_nodes = jax.random.randint(ks[7], (B, L), 0, item_count)              # history POIs
    h_times = jax.random.uniform(ks[8], (B, L), minval=0.0, maxval=10.0)
    t_time = jax.random.uniform(ks[9], (B,), minval=10.0, maxval=20.0)
    h_masks = (jax.random.uniform(ks[10], (B, L)) > 0.2).astype(jnp.float32)

    # One-time model-load preparation (bf16 table, padded distances, tile size).
    params = prepare_params(params, batch_size=B, hist_len=L)

    out = forward(params, s_nodes, h_nodes, h_times, h_masks, t_time)
    out = jax.block_until_ready(out)

    ref = reference(params, s_nodes, h_nodes, h_times, h_masks, t_time)
    assert out.shape == (B, item_count) and out.dtype == jnp.float32
    # bf16 streaming of the item table / fused LHS -> loosened tolerance vs f32 ref
    assert jnp.allclose(out, ref, atol=2e-2, rtol=2e-2), "mismatch vs reference"
    print("KERNEL_OK")
</pallas_src>

<mosaic_0001>
module attributes {stable_mosaic.version = 11 : i64} {
  func.func @_scores_kernel(%arg0: i32, %arg1: memref<16xi32, #tpu.memory_space<smem>>, %arg2: memref<24x128xbf16, #tpu.memory_space<vmem>>, %arg3: memref<16x1xf32, #tpu.memory_space<vmem>>, %arg4: memref<256x256xf32, #tpu.memory_space<any>>, %arg5: memref<256x128xbf16, #tpu.memory_space<vmem>>, %arg6: memref<8x256xf32, #tpu.memory_space<vmem>>, %arg7: memref<16x256xf32, #tpu.memory_space<vmem>>, %arg8: memref<!tpu.dma_semaphore, #tpu.memory_space<semaphore_mem>>) attributes {dimension_semantics = [#tpu.dimension_semantics<parallel>], iteration_bounds = array<i64: 1>, scalar_prefetch = 1 : i64, scratch_operands = 2 : i64, tpu.core_type = #tpu.core_type<tc>, window_params = [{pipeline_mode = #tpu.pipeline_mode<synchronous>, transform_indices = @transform_0, window_bounds = array<i64: 24, 128>}, {pipeline_mode = #tpu.pipeline_mode<synchronous>, transform_indices = @transform_1, window_bounds = array<i64: 16, 1>}, {}, {transform_indices = @transform_3, window_bounds = array<i64: 256, 128>}, {transform_indices = @transform_4, window_bounds = array<i64: 8, 256>}]} {
    %c256_i32 = arith.constant 256 : i32
    %0 = arith.muli %arg0, %c256_i32 : i32
    %1 = tpu.assume_multiple %0, 256 : i32
    %c0_i32 = arith.constant 0 : i32
    %c16_i32 = arith.constant 16 : i32
    %2 = arith.addi %c0_i32, %c16_i32 : i32
    %c1_i32 = arith.constant 1 : i32
    scf.for %arg9 = %c0_i32 to %2 step %c1_i32  : i32 {
      %20 = arith.index_cast %arg9 : i32 to index
      %21 = memref.load %arg1[%20] : memref<16xi32, #tpu.memory_space<smem>>
      %22 = tpu.memref_slice %arg4[%21, %1] : memref<256x256xf32, #tpu.memory_space<any>> -> memref<1x256xf32, #tpu.memory_space<any>>
      %c0_i32_14 = arith.constant 0 : i32
      %23 = tpu.memref_slice %arg7[%arg9, %c0_i32_14] : memref<16x256xf32, #tpu.memory_space<vmem>> -> memref<1x256xf32, #tpu.memory_space<vmem>>
      tpu.enqueue_dma source(%22 : memref<1x256xf32, #tpu.memory_space<any>>) target(%23 : memref<1x256xf32, #tpu.memory_space<vmem>>) target_semaphore(%arg8 : memref<!tpu.dma_semaphore, #tpu.memory_space<semaphore_mem>>)
    }
    %c16_i32_0 = arith.constant 16 : i32
    %c0 = arith.constant 0 : index
    %c0_1 = arith.constant 0 : index
    %3 = vector.load %arg2[%c0, %c0_1] : memref<24x128xbf16, #tpu.memory_space<vmem>>, vector<24x128xbf16>
    %c0_2 = arith.constant 0 : index
    %c0_3 = arith.constant 0 : index
    %4 = vector.load %arg5[%c0_2, %c0_3] : memref<256x128xbf16, #tpu.memory_space<vmem>>, vector<256x128xbf16>
    %cst = arith.constant dense<0.000000e+00> : vector<24x256xf32>
    %5 = tpu.matmul %3, %4, %cst {dimension_numbers = #tpu.dot_dimension_numbers<[1], [1], [0], [0], [0, 0, 1, 0], [], []>} : vector<24x128xbf16>, vector<256x128xbf16>, vector<24x256xf32> -> vector<24x256xf32>
    %c0_i32_4 = arith.constant 0 : i32
    %c16_i32_5 = arith.constant 16 : i32
    %6 = arith.addi %c0_i32_4, %c16_i32_5 : i32
    %c1_i32_6 = arith.constant 1 : i32
    scf.for %arg9 = %c0_i32_4 to %6 step %c1_i32_6  : i32 {
      %20 = arith.index_cast %arg9 : i32 to index
      %21 = memref.load %arg1[%20] : memref<16xi32, #tpu.memory_space<smem>>
      %22 = tpu.memref_slice %arg4[%21, %1] : memref<256x256xf32, #tpu.memory_space<any>> -> memref<1x256xf32, #tpu.memory_space<any>>
      %c0_i32_14 = arith.constant 0 : i32
      %23 = tpu.memref_slice %arg7[%arg9, %c0_i32_14] : memref<16x256xf32, #tpu.memory_space<vmem>> -> memref<1x256xf32, #tpu.memory_space<vmem>>
      tpu.wait_dma2 semaphore(%arg8 : memref<!tpu.dma_semaphore, #tpu.memory_space<semaphore_mem>>) src(%22 : memref<1x256xf32, #tpu.memory_space<any>>) dst(%23 : memref<1x256xf32, #tpu.memory_space<vmem>>)
    }
    %c16_i32_7 = arith.constant 16 : i32
    %c0_8 = arith.constant 0 : index
    %c0_9 = arith.constant 0 : index
    %7 = vector.load %arg7[%c0_8, %c0_9] : memref<16x256xf32, #tpu.memory_space<vmem>>, vector<16x256xf32>
    %c0_10 = arith.constant 0 : index
    %c0_11 = arith.constant 0 : index
    %8 = vector.load %arg3[%c0_10, %c0_11] : memref<16x1xf32, #tpu.memory_space<vmem>>, vector<16x1xf32>
    %9 = vector.broadcast %8 : vector<16x1xf32> to vector<16x256xf32>
    %10 = arith.mulf %7, %9 : vector<16x256xf32>
    %11 = math.exp %10 : vector<16x256xf32>
    %12 = vector.extract_strided_slice %5 {offsets = [8, 0], sizes = [16, 256], strides = [1, 1]} : vector<24x256xf32> to vector<16x256xf32>
    %13 = arith.mulf %12, %11 : vector<16x256xf32>
    %14 = vector.extract_strided_slice %5 {offsets = [0, 0], sizes = [8, 256], strides = [1, 1]} : vector<24x256xf32> to vector<8x256xf32>
    %15 = vector.extract_strided_slice %13 {offsets = [0, 0], sizes = [8, 256], strides = [1, 1]} : vector<16x256xf32> to vector<8x256xf32>
    %16 = arith.addf %14, %15 : vector<8x256xf32>
    %17 = vector.extract_strided_slice %13 {offsets = [8, 0], sizes = [8, 256], strides = [1, 1]} : vector<16x256xf32> to vector<8x256xf32>
    %18 = arith.addf %16, %17 : vector<8x256xf32>
    %c0_12 = arith.constant 0 : index
    %c0_13 = arith.constant 0 : index
    %19 = vector.load %arg6[%c0_12, %c0_13] : memref<8x256xf32, #tpu.memory_space<vmem>>, vector<8x256xf32>
    tpu.vector_store %arg6[%c0_12, %c0_13], %18 {strides = array<i32>} : memref<8x256xf32, #tpu.memory_space<vmem>>, vector<8x256xf32>,
    return
  }
  func.func @transform_0(%arg0: i32, %arg1: memref<16xi32, #tpu.memory_space<smem>>) -> (i32, i32) {
    %c0_i32 = arith.constant 0 : i32
    %c0_i32_0 = arith.constant 0 : i32
    %c0_i32_1 = arith.constant 0 : i32
    return %c0_i32, %c0_i32_0 : i32, i32
  }
  func.func @transform_1(%arg0: i32, %arg1: memref<16xi32, #tpu.memory_space<smem>>) -> (i32, i32) {
    %c0_i32 = arith.constant 0 : i32
    %c0_i32_0 = arith.constant 0 : i32
    %c0_i32_1 = arith.constant 0 : i32
    return %c0_i32, %c0_i32_0 : i32, i32
  }
  func.func @transform_3(%arg0: i32, %arg1: memref<16xi32, #tpu.memory_space<smem>>) -> (i32, i32) {
    %c0_i32 = arith.constant 0 : i32
    %c0_i32_0 = arith.constant 0 : i32
    return %arg0, %c0_i32 : i32, i32
  }
  func.func @transform_4(%arg0: i32, %arg1: memref<16xi32, #tpu.memory_space<smem>>) -> (i32, i32) {
    %c0_i32 = arith.constant 0 : i32
    %c0_i32_0 = arith.constant 0 : i32
    return %c0_i32, %arg0 : i32, i32
  }
}

</mosaic_0001>

<bundles_post_ra>
// kernel: tpu_custom_call.1
= control target key start
LH: loop header
LB: loop body
LE: loop exit
PB: predicated region body
PF: predicated region fallthrough
CT: control target
= control target key end

     0   :  { %s663_s0 = inlined_call_operand.vmem [shape: s32[16], index: 0, kind: input, shape index: {}]   ;;  %s664_s1 = inlined_call_operand.vmem [shape: bf16[24,128], index: 1, kind: input, shape index: {}]   ;;  %s665_s2 = inlined_call_operand.vmem [shape: f32[16,1], index: 2, kind: input, shape index: {}]   ;;  %s666_s3 = inlined_call_operand.hbm [shape: f32[256,256], index: 3, kind: input, shape index: {}]   ;;  %s667_s4 = inlined_call_operand.hbm [shape: bf16[256,128], index: 4, kind: input, shape index: {}]   ;;  %s668_s5 = inlined_call_operand.hbm [shape: f32[8,256], index: 5, kind: output, shape index: {}]  }
   0x1   :  { %s10_s20 = sshll.u32 %s663_s0, 4  ;;  %s11_s20 = int_to_ptr.vmem [resolvable:$true] %s10_s20 }
   0x2   :  { %s455_s21 = scalar_lea.vmem %s11_s20, 16  ;;  %p460_p1 = scmp.lt.s32.totalorder %s11_s20, %s11_s20 }
   0x3   :  { %p456_p0 = scmp.ne.s32.totalorder %s11_s20, %s455_s21  ;;  %p461_p2 = scmp.lt.s32.totalorder %s455_s21, %s455_s21 }
   0x5   :  { %p462_p3 = por %p461_p2, %p460_p1 }
   0x7   :  { %p463_p4 = pnand %p462_p3, %p456_p0 }
   0x9   :  { %466 = shalt.err (!%p463_p4)  }
   0xa   :  { %s559_s22 = smov [#allocation5]  }
   0xb   :  { %13 = dma.vmem_to_smem %s11_s20, 16, %s559_s22, [#allocation4] }
   0xc   :  { %543 = dma.done.wait [#allocation4], 16 }
   0xd   :  { %544 = vsyncadd [#allocation4], 4294967280 }
   0xe   :  { %15 = sfence }
   0xf   :  { %16 = vsyncpa [#allocation7], 0 }
  0x10   :  { %17 = vsyncpa [#allocation8], 0  ;;  %s560_s23 = smov [#allocation6]   ;;  %s467_s26 = scalar_lea.hbm %s667_s4, 2048 }
  0x11   :  { %s27_s24 = sshll.u32 %s560_s23, 4  ;;  %p468_p5 = scmp.ne.s32.totalorder %s667_s4, %s467_s26  ;;  %s28_s24 = int_to_ptr.vmem [resolvable:$true] %s27_s24 }
  0x12   :  { %p471_p6 = scmp.lt.u32.totalorder %s467_s26, %s667_s4 }
  0x14   :  { %p473_p7 = pnand %p471_p6, %p468_p5 }
  0x16   :  { %476 = shalt.err (!%p473_p7)
}
  0x17   :  { %s477_s6 = scalar_lea.vmem %s28_s24, 2048  ;;  %p482_p9 = scmp.lt.s32.totalorder %s28_s24, %s28_s24 }
  0x18   :  { %p478_p8 = scmp.ne.s32.totalorder %s28_s24, %s477_s6  ;;  %p483_p10 = scmp.lt.s32.totalorder %s477_s6, %s477_s6 }
  0x1a   :  { %p484_p11 = por %p483_p10, %p482_p9 }
  0x1c   :  { %p485_p12 = pnand %p484_p11, %p478_p8 }
  0x1e   :  { %488 = shalt.err (!%p485_p12)
}
  0x1f   :  { %s561_s7 = smov 64   ;;  %s562_s8 = smov 4  }
  0x20   :  { %33 = dma.hbm_to_vmem [thread:$0]  %s667_s4, 2048, %s28_s24, [#allocation7], %s561_s7, %s561_s7, %s562_s8  }
  0x21   :  { %545 = dma.done.wait [#allocation7], 2048  }
  0x22   :  { %546 = vsyncadd [#allocation7], 4294965248  ;;  %s613_s11 = smov 0  }
  0x23 LB: > { %s45_s12 = sld [smem:[#allocation5 + %s553_s11]]  ;;  %s56_s13 = sshrl.u32 %s553_s11, 3  ;;  %s553_s11 = sphi %s613_s11, %s44_s11  }
  0x24   : > { %s57_s14 = sand.u32 7, %s553_s11   ;;  %s348_s15 = sshll.u32 %s56_s13, 4 }
  0x25   : > { %s59_s16 = sadd.s32 %s348_s15, %s57_s14  ;;  %s491_s28 = scalar_lea.hbm %s666_s3, 8192 }
  0x26   : > { %s60_s17 = scalar_lea.vmem [#allocation2], %s59_s16 }
  0x27   : > { %s62_s18 = sshll.u32 %s60_s17, 4  ;;  %s621_s18 = int_to_ptr.vmem [resolvable:$true] %s62_s18 }
  0x29   : > { %s46_s4 = sshrl.u32 %s45_s12, 3  ;;  %s47_s19 = sand.u32 7, %s45_s12  }
  0x2a   : > { %s346_s20 = sshll.u32 %s46_s4, 4 }
  0x2b   : > { %s49_s21 = sadd.s32 %s346_s20, %s47_s19 }
  0x2c   : > { %s347_s22 = sshll.u32 %s49_s21, 4 }
  0x2d   : > { %s55_s25 = scalar_lea.hbm %s666_s3, %s347_s22 }
  0x2e   : > { %s489_s0 = scalar_lea.hbm %s55_s25, 32  ;;  %p492_p0 = scmp.lt.u32.totalorder %s55_s25, %s666_s3 }
  0x2f   : > { %p490_p13 = scmp.ne.s32.totalorder %s55_s25, %s489_s0  ;;  %p493_p1 = scmp.lt.u32.totalorder %s491_s28, %s489_s0 }
  0x30   : > { %p495_p3 = scmp.lt.u32.totalorder %s489_s0, %s55_s25 }
  0x31   : > { %p494_p2 = por %p493_p1, %p492_p0 }
  0x33   : > { %p496_p4 = por %p495_p3, %p494_p2 }
  0x35   : > { %p497_p5 = pnand %p496_p4, %p490_p13 }
  0x37   : > { %500 = shalt.err (!%p497_p5)  }
  0x38   : > { %s501_s6 = scalar_lea.vmem %s621_s18, 32  ;;  %s563_s7 = smov [#allocation2]  }
  0x39   : > { %p502_p6 = scmp.ne.s32.totalorder %s621_s18, %s501_s6  ;;  %s503_s8 = sshll.u32 %s563_s7, 4  ;;  %s504_s8 = int_to_ptr.vmem [resolvable:$false] %s503_s8 }
  0x3a   : > { %s505_s9 = scalar_lea.vmem %s504_s8, 512  ;;  %p506_p7 = scmp.lt.s32.totalorder %s621_s18, %s504_s8 }
  0x3b   : > { %p507_p8 = scmp.lt.s32.totalorder %s505_s9, %s501_s6 }
  0x3d   : > { %p508_p9 = por %p507_p8, %p506_p7 }
  0x3f   : > { %p509_p10 = pnand %p508_p9, %p502_p6 }
  0x41   : > { %512 = shalt.err (!%p509_p10)  }
  0x42   : > { %s564_s10 = smov 128   ;;  %s565_s12 = smov 1  }
  0x43   : > { %65 = dma.hbm_to_vmem [thread:$0]  %s55_s25, 32, %s621_s18, [#allocation3], %s564_s10, %s564_s10, %s565_s12 }
  0x44   : > { %s44_s11 = sadd.s32 1, %s553_s11  }
  0x45   : > { %p41_p11 = scmp.ge.s32.totalorder %s44_s11, 16  }
  0x46   :  { %v428_v0 = vld [vmem:[#allocation6 + $0x40] sm:$0xff] (%p41_p11)   ;;  %v430_v2 = vld [vmem:[#allocation6 + $0x48] sm:$0xff] (%p41_p11)   ;;  %v432_v4 = vld [vmem:[#allocation6 + $0x50] sm:$0xff] (%p41_p11)  }
  0x47   :  { %43 = sbr.rel (!%p41_p11) target bundleno = 35 (0x23), region = 52  ;;  %v429_v1 = vld [vmem:[#allocation6] sm:$0xff] (%p41_p11)   ;;  %368 = vmatprep.subr.bf16.mxu0 (%p41_p11), %v428_v0  ;;  %388 = vmatprep.subr.bf16.mxu1 (%p41_p11), %v428_v0  ;;  %v431_v3 = vld [vmem:[#allocation6 + $0x8] sm:$0xff] (%p41_p11)   ;;  %v433_v5 = vld [vmem:[#allocation6 + $0x10] sm:$0xff] (%p41_p11)  }
  0x48   :  { %369 = vmatpush3.bf16.xpose.msra.mxu0 (%p41_p11), %v429_v1  ;;  %396 = vmatpush3.bf16.xpose.msra.mxu1 (%p41_p11), %v429_v1  ;;  %v434_v6 = vld [vmem:[#allocation6 + $0x58] sm:$0xff] (%p41_p11)   ;;  %v444_v7 = vld [vmem:[%s664_s1] sm:$0xff] (%p41_p11)   ;;  %v445_v8 = vld [vmem:[%s664_s1 + $0x8] ss:$0 sps:$4 sm:$0xff] (%p41_p11)   ;;  %s555_s1 = smov (%p41_p11), 0  }
  0x49   :  { %370 = vmatprep.subr.bf16.mxu0 (%p41_p11), %v430_v2  ;;  %389 = vmatprep.subr.bf16.mxu1 (%p41_p11), %v430_v2  ;;  %v435_v9 = vld [vmem:[#allocation6 + $0x18] sm:$0xff] (%p41_p11)   ;;  %v436_v10 = vld [vmem:[#allocation6 + $0x60] sm:$0xff] (%p41_p11)   ;;  %v438_v12 = vld [vmem:[#allocation6 + $0x68] sm:$0xff] (%p41_p11)  }
  0x4a   :  { %384 = vmatprep.mubr.bf16.mxu0 (%p41_p11), %v444_v7  ;;  %386 = vmatprep.mubr.bf16.mxu1 (%p41_p11), %v445_v8  ;;  %v437_v11 = vld [vmem:[#allocation6 + $0x20] sm:$0xff] (%p41_p11)   ;;  %v439_v13 = vld [vmem:[#allocation6 + $0x28] sm:$0xff] (%p41_p11)   ;;  %v440_v14 = vld [vmem:[#allocation6 + $0x70] sm:$0xff] (%p41_p11)  }
  0x4b   :  { %v441_v15 = vld [vmem:[#allocation6 + $0x30] sm:$0xff] (%p41_p11)   ;;  %v442_v16 = vld [vmem:[#allocation6 + $0x78] sm:$0xff] (%p41_p11)  }
  0x4c   :  { %v443_v17 = vld [vmem:[#allocation6 + $0x38] sm:$0xff] (%p41_p11)  }
  0x50   :  { %371 = vmatpush3.bf16.xpose.msra.mxu0 %v431_v3  ;;  %397 = vmatpush3.bf16.xpose.msra.mxu1 %v431_v3 }
  0x51   :  { %372 = vmatprep.subr.bf16.mxu0 %v432_v4  ;;  %390 = vmatprep.subr.bf16.mxu1 %v432_v4 }
  0x58   :  { %373 = vmatpush3.bf16.xpose.msra.mxu0 %v433_v5  ;;  %398 = vmatpush3.bf16.xpose.msra.mxu1 %v433_v5 }
  0x59   :  { %374 = vmatprep.subr.bf16.mxu0 %v434_v6  ;;  %391 = vmatprep.subr.bf16.mxu1 %v434_v6 }
  0x60   :  { %375 = vmatpush3.bf16.xpose.msra.mxu0 %v435_v9  ;;  %399 = vmatpush3.bf16.xpose.msra.mxu1 %v435_v9 }
  0x61   :  { %376 = vmatprep.subr.bf16.mxu0 %v436_v10  ;;  %392 = vmatprep.subr.bf16.mxu1 %v436_v10 }
  0x68   :  { %377 = vmatpush3.bf16.xpose.msra.mxu0 %v437_v11  ;;  %400 = vmatpush3.bf16.xpose.msra.mxu1 %v437_v11 }
  0x69   :  { %378 = vmatprep.subr.bf16.mxu0 %v438_v12  ;;  %393 = vmatprep.subr.bf16.mxu1 %v438_v12 }
  0x70   :  { %379 = vmatpush3.bf16.xpose.msra.mxu0 %v439_v13  ;;  %401 = vmatpush3.bf16.xpose.msra.mxu1 %v439_v13 }
  0x71   :  { %380 = vmatprep.subr.bf16.mxu0 %v440_v14  ;;  %394 = vmatprep.subr.bf16.mxu1 %v440_v14 }
  0x78   :  { %381 = vmatpush3.bf16.xpose.msra.mxu0 %v441_v15  ;;  %402 = vmatpush3.bf16.xpose.msra.mxu1 %v441_v15 }
  0x79   :  { %382 = vmatprep.subr.bf16.mxu0 %v442_v16  ;;  %395 = vmatprep.subr.bf16.mxu1 %v442_v16 }
  0x80   :  { %383 = vmatpush3.bf16.xpose.msra.mxu0 %v443_v17  ;;  %403 = vmatpush3.bf16.xpose.msra.mxu1 %v443_v17 }
  0x87   :  { %385 = vmatmul.mubr.bf16.vlgmr.msra.gmra.mrb[0].mxu0 %v444_v7  ;;  %387 = vmatmul.mubr.bf16.vlgmr.msra.gmra.mrb[0].mxu1 %v445_v8 }
 0x15a   :  { %v241_v18 = vpop.f32.mrb[0].mxu0  ;;  %v251_v19 = vpop.f32.mrb[0].mxu1 }
 0x15b   :  { %v243_v20 = vpop.f32.mrb[1].mxu0  ;;  %v253_v21 = vpop.f32.mrb[1].mxu1 }
 0x15c   :  { %v245_v22 = vpop.f32.mrb[2].mxu0  ;;  %v255_v23 = vpop.f32.mrb[2].mxu1 }
 0x15d   :  { %v247_v24 = vpop.f32.mrb[3].mxu0  ;;  %v256_v25 = vpop.f32.mrb[3].mxu1 }
 0x15e LB: > { %547 = dma.done.wait [#allocation3], 32  ;;  %s557_s1 = sphi %s555_s1, %s263_s1  }
 0x15f   : > { %548 = vsyncadd [#allocation3], 4294967264  ;;  %s263_s1 = sadd.s32 1, %s557_s1  }
 0x160   : > { %p260_p12 = scmp.ge.s32.totalorder %s263_s1, 16  }
 0x161   :  { %v272_v26 = vld [vmem:[%s665_s2] sm:$0xff] (%p260_p12)  ;;  %v566_v27 = vmov (%p260_p12), 0   ;;  %v273_v28 = vld [vmem:[%s665_s2 + $0x8] sm:$0xff] (%p260_p12)  ;;  %v270_v34 = vld [vmem:[#allocation2 + $0x10] sm:$0xff] (%p260_p12)  ;;  %s567_s2 = smov (%p260_p12), [#allocation9]  }
 0x162   :  { %262 = sbr.rel (!%p260_p12) target bundleno = 350 (0x15e), region = 63  ;;  %446 = vset.pattern.permute.xlu0 (%p260_p12), %v566_v27  ;;  %v268_v29 = vld [vmem:[#allocation2] sm:$0xff] (%p260_p12)  ;;  %v269_v30 = vld [vmem:[#allocation2 + $0x8] sm:$0xff] (%p260_p12)  ;;  %v271_v35 = vld [vmem:[#allocation2 + $0x18] sm:$0xff] (%p260_p12)  ;;  %s312_s4 = sshll.u32 (%p260_p12), %s567_s2, 4  ;;  %s313_s4 = int_to_ptr.vmem [resolvable:$true] %s312_s4 }
 0x163   :  { %276 = vperm.xlu0 (%p260_p12), %446, %v272_v26   ;;  %s513_s19 = scalar_lea.vmem (%p260_p12), %s313_s4, 256  ;;  %p518_p0 = scmp.lt.s32.totalorder (%p260_p12), %s313_s4, %s313_s4 }
 0x164   :  { %p514_p13 = scmp.ne.s32.totalorder (%p260_p12), %s313_s4, %s513_s19  ;;  %p519_p1 = scmp.lt.s32.totalorder (%p260_p12), %s513_s19, %s513_s19 }
 0x166   :  { %p520_p2 = por (%p260_p12), %p519_p1, %p518_p0 }
 0x167   :  { %281 = vperm.xlu0 (%p260_p12), %446, %v273_v28  }
 0x168   :  { %p521_p3 = pnand (%p260_p12), %p520_p2, %p514_p13 }
 0x1e2   :  { %v277_v31 = vpop.permute.xlu0 %276 }
 0x1e3   :  { %v284_v32 = vmul.f32 %v277_v31, %v268_v29  ;;  %v285_v33 = vmul.f32 %v277_v31, %v269_v30 }
 0x1e5   :  { %v288_v36 = vmul.f32 1.442695, %v284_v32  ;;  %v290_v37 = vmul.f32 1.442695, %v285_v33 }
 0x1e6   :  { %v282_v38 = vpop.permute.xlu0 %281 }
 0x1e7   :  { %447 = vpow2.f32 %v288_v36  ;;  %v286_v39 = vmul.f32 %v282_v38, %v270_v34  ;;  %v287_v40 = vmul.f32 %v282_v38, %v271_v35 }
 0x1e8   :  { %449 = vpow2.f32 %v290_v37 }
 0x1e9   :  { %v292_v41 = vmul.f32 1.442695, %v286_v39  ;;  %v294_v42 = vmul.f32 1.442695, %v287_v40 }
 0x1eb   :  { %451 = vpow2.f32 %v292_v41 }
 0x1ec   :  { %453 = vpow2.f32 %v294_v42 }
 0x1f1   :  { %v448_v43 = vpop.eup %447 }
 0x1f2   :  { %v450_v44 = vpop.eup %449  ;;  %v296_v45 = vmul.f32 %v448_v43, %v245_v22 }
 0x1f3   :  { %v297_v46 = vmul.f32 %v450_v44, %v247_v24 }
 0x1f4   :  { %v300_v50 = vadd.f32 %v296_v45, %v241_v18 }
 0x1f5   :  { %v452_v47 = vpop.eup %451  ;;  %v301_v52 = vadd.f32 %v297_v46, %v243_v20 }
 0x1f6   :  { %v454_v48 = vpop.eup %453  ;;  %v298_v49 = vmul.f32 %v452_v47, %v251_v19 }
 0x1f7   :  { %v299_v51 = vmul.f32 %v454_v48, %v253_v21 }
 0x1f8   :  { %v302_v53 = vadd.f32 %v300_v50, %v298_v49 }
 0x1f9   :  { %v303_v54 = vadd.f32 %v301_v52, %v299_v51 }
 0x1fa   :  { %304 = vst [vmem:[#allocation9] sm:$0xff] %v302_v53 }
 0x1fb   :  { %305 = vst [vmem:[#allocation9 + $0x8] sm:$0xff] %v303_v54 }
 0x1fc   :  { %524 = shalt.err (!%p521_p3)
}
 0x1fd   :  { %s525_s22 = scalar_lea.hbm %s668_s5, 256 }
 0x1fe   :  { %p526_p4 = scmp.ne.s32.totalorder %s668_s5, %s525_s22  ;;  %p529_p5 = scmp.lt.u32.totalorder %s525_s22, %s668_s5 }
 0x200   :  { %p531_p6 = pnand %p529_p5, %p526_p4 }
 0x202   :  { %534 = shalt.err (!%p531_p6)
}
 0x203   :  { %315 = dma.vmem_to_hbm [thread:$0]  %s313_s4, 256, %s668_s5, [#allocation8]  }
 0x204   :  { %549 = dma.done.wait [#allocation8], 256  }
 0x205   :  { %550 = vsyncadd [#allocation8], 4294967040 }
 0x206   :  { %319 = vsyncpa [#allocation7], 1 }
 0x207   :  { %320 = vsyncpa [#allocation8], 1 }
 0x208   :  { %321 = vsyncmov [#allocation3] }
 0x20b   :  { %s322_s28 = vpop.sfrf %321 }
 0x20c   :  { %p367_p7 = scmp.ne.s32.totalorder %s322_s28, 0 }
 0x20e   :  { %326 = shalt.err (%p367_p7)  }

</bundles_post_ra>
